<compile_context>
chip_gen: v6e
topology: v6e:2x2x1
jax: 0.10.0
libtpu: 0.0.40
codegen_flags: <defaults>
</compile_context>

<pallas_src>
import functools

import jax
import jax.numpy as jnp
from jax.experimental import pallas as pl
from jax.experimental.pallas import tpu as pltpu


# --------------------------------------------------------------------------- #
# Kernels
# --------------------------------------------------------------------------- #
def _pos_enc_eval_kernel(x_ref, pos_ref, o_ref):
    # x_ref: (TB, TL); pos_ref: (1, TL) broadcast over the TB rows.
    o_ref[...] = (x_ref[...] + pos_ref[...]).astype(o_ref.dtype)


def _pos_enc_train_kernel(seed_ref, x_ref, pos_ref, o_ref, *, p: float):
    y = x_ref[...] + pos_ref[...]
    # Unique linear block id; hash with a golden-ratio odd constant so adjacent
    # blocks get decorrelated hardware-PRNG streams (scalar-slot cost only).
    block_id = pl.program_id(0) * pl.num_programs(1) + pl.program_id(1)
    pltpu.prng_seed(seed_ref[0] ^ (block_id * jnp.int32(-1640531527)))  # 0x9E3779B9
    bits = pltpu.bitcast(pltpu.prng_random_bits(y.shape), jnp.uint32)
    # keep iff uniform < (1 - p); truncation bias is <= 2^-32 (negligible).
    threshold = jnp.uint32(min(int((1.0 - p) * 4294967296.0), 4294967295))
    keep = bits < threshold
    scale = jnp.float32(1.0 / (1.0 - p))
    o_ref[...] = jnp.where(keep, y * scale, 0.0).astype(o_ref.dtype)
    # NOTE: the concrete dropout mask depends on the tile/grid choice (seed is
    # hashed per block); only the dropout distribution is specified.


# --------------------------------------------------------------------------- #
# Generation / tiling heuristics
# --------------------------------------------------------------------------- #
def _tpu_generation():
    """Returns (vmem_capacity_bytes, looks_like_v7x)."""
    cap = None
    try:
        info = pltpu.get_tpu_info()
        cap = int(getattr(info, "vmem_capacity_bytes", 0)) or None
    except Exception:
        cap = None
    kind = ""
    try:
        kind = jax.devices()[0].device_kind.lower()
    except Exception:
        pass
    is_v7 = ("v7" in kind) or ("7x" in kind) or (cap is not None and cap <= (64 << 20))
    if cap is None:
        cap = (64 << 20) if is_v7 else (128 << 20)
    return cap, is_v7


def _choose_tiles(batch, sd, itemsize, target_bytes, sub, ensure_two_steps):
    """Pick (tb, tl): batch rows (multiple of `sub` or full) and lane chunk
    (multiple of 128 or full) so tb*tl*itemsize ~= target_bytes, lane-dense."""
    min_rows = batch if batch <= sub else sub

    # Lane (last-dim) tile: keep the full row if `min_rows` full rows fit the
    # target, otherwise shrink to a multiple of 128 elements.
    if sd <= 128 or min_rows * sd * itemsize <= target_bytes:
        tl = sd
    else:
        tl = (target_bytes // (min_rows * itemsize)) // 128 * 128
        tl = max(128, min(tl, sd))

    # Batch (second-minor) tile: grow rows up to the target, sublane-aligned.
    chunk = tl * itemsize
    if batch <= sub or batch * chunk <= target_bytes:
        tb = batch
    else:
        tb = (target_bytes // chunk) // sub * sub
        tb = max(sub, min(tb, batch))

    # v7x: make sure there are >= 2 grid steps so both TensorCores get work.
    if ensure_two_steps and pl.cdiv(batch, tb) * pl.cdiv(sd, tl) < 2:
        if batch > sub:
            half = -(-batch // 2)                      # ceil(B/2)
            tb = min(tb, -(-half // sub) * sub)        # round up to `sub`
        elif sd >= 256:
            tl = min(tl, max(128, (sd // 2) // 128 * 128))
    return tb, tl


# --------------------------------------------------------------------------- #
# Wrapper
# --------------------------------------------------------------------------- #
def gpt_positional_encoding(values, pos_encoding, *, p: float = 0.1,
                            training: bool = False, seed: int = 0):
    """values: (B, S, D); pos_encoding: (S, D). Returns dropout(values + pos)."""
    B, S, D = values.shape
    assert pos_encoding.shape == (S, D)
    SD = S * D

    # Lane-dense view: fold (S, D) into one trailing axis of width S*D.
    # Output keeps values.dtype (if values is bf16 and pos is f32 the sum is
    # downcast back to bf16 — a deliberate, tiny deviation from torch promotion).
    x2 = values.reshape(B, SD)
    pos2 = pos_encoding.reshape(1, SD)

    itemsize = jnp.dtype(values.dtype).itemsize
    pos_item = jnp.dtype(pos_encoding.dtype).itemsize
    sub = max(8, 32 // itemsize)            # dtype-aware sublane alignment

    vmem_cap, is_v7 = _tpu_generation()
    # Bigger blocks on v7x (faster HBM -> amortize per-step overhead further).
    target = (6 << 20) if is_v7 else (2 << 20)
    use_dropout = bool(training) and p > 0.0
    if use_dropout:
        # Leave room for the uint32 PRNG-bits block and the f32-promoted sum.
        target = int(target * 4.0 / (4.0 + 8.0 / itemsize))

    tb, tl = _choose_tiles(B, SD, itemsize, target, sub, ensure_two_steps=is_v7)
    nb, nl = pl.cdiv(B, tb), pl.cdiv(SD, tl)

    # Lane axis outermost when it actually tiles: the pos block index is then
    # constant across inner batch steps (no re-DMA), and the outer parallel
    # axis has plenty of steps for megacore sharding.
    lane_major = nl > 1
    grid = (nl, nb) if lane_major else (nb, nl)

    # VMEM budget: double-buffered x + out blocks, double-buffered pos block,
    # plus the training-path temporaries; cap at ~70% of physical VMEM.
    blk = tb * tl * itemsize
    needed = 4 * blk + 2 * tl * pos_item
    if use_dropout:
        needed += 2 * tb * tl * 4           # uint32 PRNG bits + f32 sum
    vmem_limit = int(min(max(needed + (4 << 20), 16 << 20), int(0.7 * vmem_cap)))

    compiler_params = pltpu.CompilerParams(
        dimension_semantics=("parallel", "parallel"),
        vmem_limit_bytes=vmem_limit,
    )
    out_shape = jax.ShapeDtypeStruct((B, SD), values.dtype)

    if use_dropout:
        if lane_major:
            xidx = lambda j, b, seed_ref: (b, j)
            pidx = lambda j, b, seed_ref: (0, j)
        else:
            xidx = lambda b, j, seed_ref: (b, j)
            pidx = lambda b, j, seed_ref: (0, j)
        grid_spec = pltpu.PrefetchScalarGridSpec(
            num_scalar_prefetch=1,          # seed lands in SMEM
            grid=grid,
            in_specs=[
                pl.BlockSpec((tb, tl), xidx),   # x rows
                pl.BlockSpec((1, tl), pidx),    # pos table (broadcast over rows)
            ],
            out_specs=pl.BlockSpec((tb, tl), xidx),
        )
        out2 = pl.pallas_call(
            functools.partial(_pos_enc_train_kernel, p=p),
            out_shape=out_shape,
            grid_spec=grid_spec,
            compiler_params=compiler_params,
            input_output_aliases={1: 0},    # reuse x2's HBM buffer for the output
        )(jnp.array([seed], dtype=jnp.int32), x2, pos2)
    else:
        # Hot inference path: no scalar prefetch, no seed argument.
        if lane_major:
            xidx = lambda j, b: (b, j)
            pidx = lambda j, b: (0, j)
        else:
            xidx = lambda b, j: (b, j)
            pidx = lambda b, j: (0, j)
        grid_spec = pltpu.PrefetchScalarGridSpec(
            num_scalar_prefetch=0,
            grid=grid,
            in_specs=[
                pl.BlockSpec((tb, tl), xidx),
                pl.BlockSpec((1, tl), pidx),
            ],
            out_specs=pl.BlockSpec((tb, tl), xidx),
        )
        out2 = pl.pallas_call(
            _pos_enc_eval_kernel,
            out_shape=out_shape,
            grid_spec=grid_spec,
            compiler_params=compiler_params,
            input_output_aliases={0: 0},    # reuse x2's HBM buffer for the output
        )(x2, pos2)

    return out2.reshape(B, S, D)


# --------------------------------------------------------------------------- #
# Self-test
# --------------------------------------------------------------------------- #
if __name__ == "__main__":
    # Small shapes consistent with the module: batch=2, block_size=8, dim_model=32.
    B, S, D = 2, 8, 32
    dropout_p = 0.1

    key = jax.random.PRNGKey(0)
    kx, kp = jax.random.split(key)
    x = jax.random.normal(kx, (B, S, D), dtype=jnp.float32)

    # nn.Parameter(torch.zeros(...)) initializes to zeros; use a small deterministic
    # perturbation so the add is observable.
    pos_encoding = 0.01 * jax.random.normal(kp, (S, D), dtype=jnp.float32)

    # Eval-mode forward (dropout = identity), matching module.eval() semantics.
    out = gpt_positional_encoding(x, pos_encoding, p=dropout_p, training=False)
    out = jax.block_until_ready(out)

    ref = x + pos_encoding[None, :, :]
    assert out.shape == (B, S, D)
    assert jnp.allclose(out, ref, atol=1e-6), "mismatch vs reference"

    # Training-mode dropout uses the TPU hardware PRNG, which has no CPU-interpret
    # lowering; only exercise it on a real TPU backend.
    if jax.default_backend() == "tpu":
        out_train = gpt_positional_encoding(x, pos_encoding, p=dropout_p,
                                            training=True, seed=123)
        out_train = jax.block_until_ready(out_train)
        scale = 1.0 / (1.0 - dropout_p)
        ok = jnp.logical_or(jnp.isclose(out_train, ref * scale, atol=1e-5),
                            out_train == 0.0)
        assert bool(jnp.all(ok)), "training-mode dropout output inconsistent"

    print("KERNEL_OK")
</pallas_src>

<mosaic_0001>
module attributes {stable_mosaic.version = 11 : i64} {
  func.func @_pos_enc_eval_kernel(%arg0: i32, %arg1: i32, %arg2: memref<2x256xf32, #tpu.memory_space<vmem>>, %arg3: memref<1x256xf32, #tpu.memory_space<vmem>>, %arg4: memref<2x256xf32, #tpu.memory_space<vmem>>) attributes {dimension_semantics = [#tpu.dimension_semantics<parallel>, #tpu.dimension_semantics<parallel>], iteration_bounds = array<i64: 1, 1>, scalar_prefetch = 0 : i64, scratch_operands = 0 : i64, tpu.core_type = #tpu.core_type<tc>, window_params = [{transform_indices = @transform_0, window_bounds = array<i64: 2, 256>}, {transform_indices = @transform_1, window_bounds = array<i64: 1, 256>}, {transform_indices = @transform_2, window_bounds = array<i64: 2, 256>}]} {
    %c0 = arith.constant 0 : index
    %c0_0 = arith.constant 0 : index
    %0 = vector.load %arg2[%c0, %c0_0] : memref<2x256xf32, #tpu.memory_space<vmem>>, vector<2x256xf32>
    %c0_1 = arith.constant 0 : index
    %c0_2 = arith.constant 0 : index
    %1 = vector.load %arg3[%c0_1, %c0_2] : memref<1x256xf32, #tpu.memory_space<vmem>>, vector<1x256xf32>
    %2 = vector.broadcast %1 : vector<1x256xf32> to vector<2x256xf32>
    %3 = arith.addf %0, %2 : vector<2x256xf32>
    %c0_3 = arith.constant 0 : index
    %c0_4 = arith.constant 0 : index
    %4 = vector.load %arg4[%c0_3, %c0_4] : memref<2x256xf32, #tpu.memory_space<vmem>>, vector<2x256xf32>
    tpu.vector_store %arg4[%c0_3, %c0_4], %3 {strides = array<i32>} : memref<2x256xf32, #tpu.memory_space<vmem>>, vector<2x256xf32>,
    return
  }
  func.func @transform_0(%arg0: i32, %arg1: i32) -> (i32, i32) {
    %c0_i32 = arith.constant 0 : i32
    return %arg0, %arg1 : i32, i32
  }
  func.func @transform_1(%arg0: i32, %arg1: i32) -> (i32, i32) {
    %c0_i32 = arith.constant 0 : i32
    %c0_i32_0 = arith.constant 0 : i32
    return %c0_i32, %arg1 : i32, i32
  }
  func.func @transform_2(%arg0: i32, %arg1: i32) -> (i32, i32) {
    %c0_i32 = arith.constant 0 : i32
    return %arg0, %arg1 : i32, i32
  }
}

</mosaic_0001>

<bundles_post_ra>
// kernel: tpu_custom_call.1
= control target key start
LH: loop header
LB: loop body
LE: loop exit
PB: predicated region body
PF: predicated region fallthrough
CT: control target
= control target key end

     0   :  { %7 = vsyncpa [#allocation3], 0  ;;  %s135_s0 = inlined_call_operand.hbm [shape: f32[2,256], index: 0, kind: input, shape index: {}, may-alias: {0,2}]   ;;  %s136_s1 = inlined_call_operand.vmem [shape: f32[1,256], index: 1, kind: input, shape index: {}]   ;;  %s137_s2 = inlined_call_operand.hbm [shape: f32[2,256], index: 2, kind: output, shape index: {}, may-alias: {0,2}]  }
   0x1   :  { %8 = vsyncpa [#allocation4], 0  ;;  %s108_s9 = smov [#allocation2]  }
   0x2   :  { %s15_s10 = sshll.u32 %s108_s9, 4  ;;  %s16_s10 = int_to_ptr.vmem [resolvable:$true] %s15_s10 }
   0x3   :  { %s72_s11 = scalar_lea.vmem %s16_s10, 64  ;;  %p77_p1 = scmp.lt.s32.totalorder %s16_s10, %s16_s10 }
   0x4   :  { %p73_p0 = scmp.ne.s32.totalorder %s16_s10, %s72_s11  ;;  %p78_p2 = scmp.lt.s32.totalorder %s72_s11, %s72_s11 }
   0x6   :  { %p79_p3 = por %p78_p2, %p77_p1 }
   0x8   :  { %p80_p4 = pnand %p79_p3, %p73_p0 }
   0xa   :  { %83 = shalt.err (!%p80_p4)
}
   0xb   :  { %18 = dma.hbm_to_vmem [thread:$0]  %s135_s0, 64, %s16_s10, [#allocation3]  }
   0xc   :  { %104 = dma.done.wait [#allocation3], 64  }
   0xd   :  { %105 = vsyncadd [#allocation3], 4294967232  ;;  %v27_v0 = vlaneseq  ;;  %v109_v1 = vmov 1983009808   ;;  %v25_v7 = vld [vmem:[%s136_s1] sm:$0x3] }
   0xe   :  { %v37_v2 = vunpack.c.l.s4 %v109_v1  ;;  %v24_v12 = vld [vmem:[#allocation2] sm:$0xf]  ;;  %s110_s16 = smov [#allocation5]  }
   0xf   :  { %v28_v3 = vshrl.u32 %v27_v0, 7  ;;  %s52_s0 = sshll.u32 %s110_s16, 4  ;;  %s53_s0 = int_to_ptr.vmem [resolvable:$true] %s52_s0 }
  0x10   :  { %v38_v6 = vunpack.c.0.s8 %v37_v2  ;;  %s84_s17 = scalar_lea.vmem %s53_s0, 64  ;;  %p89_p6 = scmp.lt.s32.totalorder %s53_s0, %s53_s0 }
  0x11   :  { %v29_v4 = vsub.s32 0, %v28_v3  ;;  %v33_v5 = vsub.s32 1, %v28_v3  ;;  %p85_p5 = scmp.ne.s32.totalorder %s53_s0, %s84_s17  ;;  %p90_p7 = scmp.lt.s32.totalorder %s84_s17, %s84_s17 }
  0x12   :  { %v41_v10 = vsub.s32 %v38_v6, %v28_v3 }
  0x13   :  { %v30_v8 = vrot.slane %v25_v7, %v29_v4  ;;  %v34_v9 = vrot.slane %v25_v7, %v33_v5  ;;  %p91_p8 = por %p90_p7, %p89_p6 }
  0x15   :  { %v35_v11 = vcombine.low %v30_v8, %v34_v9  ;;  %p92_p9 = pnand %p91_p8, %p85_p5 }
  0x17   :  { %v42_v13 = vrot.slane %v35_v11, %v41_v10 }
  0x19   :  { %v44_v14 = vadd.f32 %v42_v13, %v24_v12 }
  0x1b   :  { %45 = vst [vmem:[#allocation5] sm:$0xf] %v44_v14 }
  0x1c   :  { %95 = shalt.err (!%p92_p9)
}
  0x1d   :  { %55 = dma.vmem_to_hbm [thread:$0]  %s53_s0, 64, %s137_s2, [#allocation4]  }
  0x1e   :  { %106 = dma.done.wait [#allocation4], 64  }
  0x1f   :  { %107 = vsyncadd [#allocation4], 4294967232 }
  0x20   :  { %59 = vsyncpa [#allocation3], 1 }
  0x21   :  { %60 = vsyncpa [#allocation4], 1 }

</bundles_post_ra>
